<compile_context>
chip_gen: v6e
topology: v6e:2x2x1
jax: 0.10.0
libtpu: 0.0.40
codegen_flags: <defaults>
</compile_context>

<pallas_src>
import functools

import jax
import jax.numpy as jnp
import numpy as np
from jax.experimental import pallas as pl
from jax.experimental.pallas import tpu as pltpu


def _decoder_block_kernel(skip_ref, up_ref, w_ref, scale_ref, bias_ref, out_ref,
                          *, K, p, W, S):
    """One (batch, row-tile) block per grid step.

    skip_ref  : (1, 1, Cin, (tH+2p)*W + 2p)  halo'd row tile, W-flattened,
                guard-padded by p elements on each end of the flat axis
    up_ref    : (1, Cout, S)    upsampled `previous`, S = tH*W (lane axis)
    w_ref     : (Cout, K*K*Cin) conv taps, column order (dy, dx, ci)
    scale_ref : (Cout, 1)       folded BatchNorm scale
    bias_ref  : (Cout, 1)       folded BatchNorm bias
    out_ref   : (1, Cout, S)
    """
    # lane position within each image row (for W-boundary zero padding)
    w_pos = jax.lax.broadcasted_iota(jnp.int32, (1, S), 1) % W

    # im2col patch matrix (K*K*Cin, S) out of static lane-shifted views.
    # Flat-index trick: output (h, w) with tap (dy, dx) reads flat index
    #   (h*W + w) + (dy*W + dx)
    # of the guard-padded flat tile — a static lane shift.  Columns where
    # w + dx - p falls outside [0, W) are the conv's zero padding -> masked.
    patches = []
    for dy in range(K):
        for dx in range(K):
            off = dy * W + dx
            sl = skip_ref[0, 0, :, off:off + S]                     # (Cin, S)
            if dx != p:
                valid = (w_pos >= (p - dx)) & (w_pos < (W + p - dx))
                sl = jnp.where(valid, sl, jnp.zeros_like(sl))
            patches.append(sl)
    pmat = jnp.concatenate(patches, axis=0)                         # (K*K*Cin, S)

    # single MXU contraction of depth K*K*Cin, f32 accumulation
    acc = jnp.dot(w_ref[...], pmat,
                  preferred_element_type=jnp.float32)               # (Cout, S)

    # BatchNorm (folded, eval form) + ReLU + fusion='sum' — lane-dense VPU ops
    y = acc * scale_ref[...] + bias_ref[...]
    y = jnp.maximum(y, 0.0)
    y = y + up_ref[0].astype(jnp.float32)
    out_ref[0] = y.astype(out_ref.dtype)


def _pick_tile_rows(H, W, Cin, Cout, itemsize, p, budget_bytes=8 << 20):
    """Largest row tile whose flattened spatial size is a multiple of 128
    (lane-dense), divides H, and fits a conservative per-step VMEM budget
    (safe for v7x's 64 MiB/TC)."""
    for tile_rows in (256, 128, 64, 32, 16, 8, 4, 2, 1):
        if tile_rows >= H or H % tile_rows != 0 or (tile_rows * W) % 128 != 0:
            continue
        tile_bytes = (((tile_rows + 2 * p) * W + 2 * p) * Cin * itemsize
                      + 2 * tile_rows * W * Cout * 4)
        if tile_bytes <= budget_bytes:
            return tile_rows
    return H  # fall back: whole image per grid step


def decoder_block_pallas(skip_tiles, up_flat, w2, scale_c, bias_c, *,
                         K, p, W, tile_rows, out_dtype):
    """skip_tiles: (N, nH, Cin, Tflat); up_flat: (N, Cout, H*W)."""
    N, nH, Cin, Tflat = skip_tiles.shape
    _, Cout, HW = up_flat.shape
    S = tile_rows * W
    KKC = K * K * Cin

    kern = functools.partial(_decoder_block_kernel, K=K, p=p, W=W, S=S)

    # per-step VMEM estimate: double-buffered ins/outs + patch matrix + f32 acc
    est = (2 * Cin * Tflat * skip_tiles.dtype.itemsize
           + 2 * Cout * S * up_flat.dtype.itemsize
           + 2 * Cout * S * jnp.dtype(out_dtype).itemsize
           + Cout * KKC * w2.dtype.itemsize
           + (KKC + Cout) * S * 4)
    vmem_limit = int(min(max(8 * est, 8 << 20), 64 << 20))

    return pl.pallas_call(
        kern,
        out_shape=jax.ShapeDtypeStruct((N, Cout, HW), out_dtype),
        grid=(N, nH),
        in_specs=[
            pl.BlockSpec((1, 1, Cin, Tflat), lambda n, t: (n, t, 0, 0)),
            pl.BlockSpec((1, Cout, S), lambda n, t: (n, 0, t)),
            pl.BlockSpec((Cout, KKC), lambda n, t: (0, 0)),
            pl.BlockSpec((Cout, 1), lambda n, t: (0, 0)),
            pl.BlockSpec((Cout, 1), lambda n, t: (0, 0)),
        ],
        out_specs=pl.BlockSpec((1, Cout, S), lambda n, t: (n, 0, t)),
        compiler_params=pltpu.CompilerParams(
            dimension_semantics=("parallel", "parallel"),
            vmem_limit_bytes=vmem_limit,
        ),
    )(skip_tiles, up_flat, w2, scale_c, bias_c)


def decoder_block_forward(previous_nchw, skip_nchw, params, compute_dtype=None):
    """Full DecoderBlock forward (fusion='sum'). NCHW in, NCHW out.

    compute_dtype: optional dtype (e.g. jnp.bfloat16) for the MXU/HBM tensors
    (skip, conv weights, upsampled).  Accumulation and the BN/ReLU/sum
    epilogue are always f32.
    """
    N, Cout, hp, wp = previous_nchw.shape
    _, Cin, hs, ws = skip_nchw.shape
    out_dtype = previous_nchw.dtype

    # --- glue: bilinear upsample (align_corners=False / half-pixel centers) --
    # TODO(synk): fuse the 2x bilinear upsample into the kernel (VPU expand of
    # the low-res tile) to avoid materializing `up` in HBM.
    # TODO(synk): jax.image.resize matches torch interpolate(align_corners=False)
    # for exact power-of-two scales; non-integer scales may diverge slightly.
    scale = 2 ** np.round(np.log2(np.array([hs / hp, ws / wp])))
    hu, wu = int(round(hp * scale[0])), int(round(wp * scale[1]))
    up = jax.image.resize(previous_nchw, (N, Cout, hu, wu),
                          method="bilinear", antialias=False)

    # --- glue: crop / zero-pad skip to the upsampled spatial size ---
    if hu <= hs and wu <= ws:
        skip = skip_nchw[:, :, :hu, :wu]
    elif hu >= hs and wu >= ws:
        skip = jnp.pad(skip_nchw, ((0, 0), (0, 0), (0, hu - hs), (0, wu - ws)))
    else:
        raise ValueError(
            f"Inconsistent skip vs upsampled shapes: {(hs, ws)}, {(hu, wu)}")
    H, W = hu, wu

    K = params["ksize"]
    p = K // 2
    w_hwio = jnp.asarray(params["conv_w"])          # (K, K, Cin, Cout)

    # pad Cin to a multiple of 16 so the in-kernel im2col concat is
    # sublane-tile aligned for both f32 and bf16 pieces
    cin_pad = (-Cin) % 16
    if cin_pad:
        skip = jnp.pad(skip, ((0, 0), (0, cin_pad), (0, 0), (0, 0)))
        w_hwio = jnp.pad(w_hwio, ((0, 0), (0, 0), (0, cin_pad), (0, 0)))
    Cin_p = Cin + cin_pad

    # conv weight: HWIO -> (Cout, K*K*Cin_p), columns ordered (dy, dx, ci)
    w2 = w_hwio.reshape(K * K * Cin_p, Cout).T

    # fold BatchNorm2d (inference / running-stats form) into scale + bias
    # TODO(synk): PyTorch train-mode batch statistics are not reproduced;
    # BatchNorm is applied in eval (running-stats) form.
    eps = 1e-5
    scale_c = params["gamma"] / jnp.sqrt(params["running_var"] + eps)
    bias_c = params["beta"] - params["running_mean"] * scale_c
    scale_c = scale_c.astype(jnp.float32).reshape(Cout, 1)
    bias_c = bias_c.astype(jnp.float32).reshape(Cout, 1)

    if compute_dtype is not None:
        skip = skip.astype(compute_dtype)
        w2 = w2.astype(compute_dtype)
        up = up.astype(compute_dtype)

    # --- glue: halo'd, W-flattened row tiles of skip (channel-major) ---
    # One extra pass over skip; expansion factor (tile_rows + 2p)/tile_rows.
    # TODO(synk): avoid the halo duplication with a manual-DMA (pl.ANY) skip
    # input if this pass ever matters at realistic FPN sizes.
    tile_rows = _pick_tile_rows(H, W, Cin_p, Cout, skip.dtype.itemsize, p)
    nH = H // tile_rows
    skip_hpad = jnp.pad(skip, ((0, 0), (0, 0), (p, p), (0, 0)))
    tiles = jnp.stack(
        [skip_hpad[:, :, t * tile_rows: t * tile_rows + tile_rows + 2 * p, :]
         for t in range(nH)], axis=1)               # (N, nH, Cin_p, tH+2p, W)
    tiles = tiles.reshape(N, nH, Cin_p, (tile_rows + 2 * p) * W)
    tiles = jnp.pad(tiles, ((0, 0), (0, 0), (0, 0), (p, p)))  # flat guard pad

    up_flat = up.reshape(N, Cout, H * W)

    out_flat = decoder_block_pallas(tiles, up_flat, w2, scale_c, bias_c,
                                    K=K, p=p, W=W, tile_rows=tile_rows,
                                    out_dtype=out_dtype)
    return out_flat.reshape(N, Cout, H, W)


def _reference_forward(previous_nchw, skip_nchw, params):
    """Pure-JAX NCHW reference (same upsample glue, lax conv)."""
    N, Cout, hp, wp = previous_nchw.shape
    _, Cin, hs, ws = skip_nchw.shape
    scale = 2 ** np.round(np.log2(np.array([hs / hp, ws / wp])))
    hu, wu = int(round(hp * scale[0])), int(round(wp * scale[1]))
    up = jax.image.resize(previous_nchw, (N, Cout, hu, wu),
                          method="bilinear", antialias=False)
    if hu <= hs and wu <= ws:
        skip = skip_nchw[:, :, :hu, :wu]
    else:
        skip = jnp.pad(skip_nchw, ((0, 0), (0, 0), (0, hu - hs), (0, wu - ws)))
    K = params["ksize"]
    p = K // 2
    conv = jax.lax.conv_general_dilated(
        skip, params["conv_w"], window_strides=(1, 1),
        padding=[(p, p), (p, p)],
        dimension_numbers=("NCHW", "HWIO", "NCHW"))
    eps = 1e-5
    sc = params["gamma"] / jnp.sqrt(params["running_var"] + eps)
    bc = params["beta"] - params["running_mean"] * sc
    y = jnp.maximum(conv * sc[None, :, None, None] + bc[None, :, None, None], 0.0)
    return y + up


if __name__ == "__main__":
    # previous: (N, out_ch, 8, 8)   skip: (N, prev_ch, 16, 16)
    N, prev_ch, out_ch = 2, 4, 8
    hp = wp = 8
    hs = ws = 16

    key = jax.random.PRNGKey(0)
    k1, k2, k3, k4, k5, k6, k7 = jax.random.split(key, 7)

    previous = jax.random.normal(k1, (N, out_ch, hp, wp), jnp.float32)
    skip = jax.random.normal(k2, (N, prev_ch, hs, ws), jnp.float32)

    ksize = 3
    params = {
        "ksize": ksize,
        # Conv2d(prev_ch -> out_ch, 3x3, bias=False) weights in HWIO layout.
        "conv_w": jax.random.normal(k3, (ksize, ksize, prev_ch, out_ch),
                                    jnp.float32) * 0.2,
        # BatchNorm2d(out_ch) parameters / running stats (deterministic).
        "gamma": 0.5 + jax.random.uniform(k4, (out_ch,), jnp.float32),
        "beta": jax.random.normal(k5, (out_ch,), jnp.float32) * 0.1,
        "running_mean": jax.random.normal(k6, (out_ch,), jnp.float32) * 0.1,
        "running_var": jnp.abs(jax.random.normal(k7, (out_ch,), jnp.float32)) + 1.0,
    }

    ref = jax.block_until_ready(_reference_forward(previous, skip, params))

    # f32 path — exact check against the pure-JAX reference
    out = jax.block_until_ready(decoder_block_forward(previous, skip, params))
    assert out.shape == (N, out_ch, hs, ws)
    np.testing.assert_allclose(np.asarray(out), np.asarray(ref),
                               rtol=1e-4, atol=1e-4)

    # bf16 MXU-input path (v6e/v7x): f32 accumulation + epilogue, loose check
    out_bf16 = jax.block_until_ready(
        decoder_block_forward(previous, skip, params,
                              compute_dtype=jnp.bfloat16))
    np.testing.assert_allclose(np.asarray(out_bf16, dtype=np.float32),
                               np.asarray(ref), rtol=0.1, atol=0.3)

    print("KERNEL_OK")
</pallas_src>

<mosaic_0001>
module attributes {stable_mosaic.version = 11 : i64} {
  func.func @_decoder_block_kernel(%arg0: i32, %arg1: i32, %arg2: memref<1x1x16x162xf32, #tpu.memory_space<vmem>>, %arg3: memref<1x8x128xf32, #tpu.memory_space<vmem>>, %arg4: memref<8x144xf32, #tpu.memory_space<vmem>>, %arg5: memref<8x1xf32, #tpu.memory_space<vmem>>, %arg6: memref<8x1xf32, #tpu.memory_space<vmem>>, %arg7: memref<1x8x128xf32, #tpu.memory_space<vmem>>) attributes {dimension_semantics = [#tpu.dimension_semantics<parallel>, #tpu.dimension_semantics<parallel>], iteration_bounds = array<i64: 2, 2>, scalar_prefetch = 0 : i64, scratch_operands = 0 : i64, tpu.core_type = #tpu.core_type<tc>, window_params = [{transform_indices = @transform_0, window_bounds = array<i64: 1, 1, 16, 162>}, {transform_indices = @transform_1, window_bounds = array<i64: 1, 8, 128>}, {pipeline_mode = #tpu.pipeline_mode<synchronous>, transform_indices = @transform_2, window_bounds = array<i64: 8, 144>}, {pipeline_mode = #tpu.pipeline_mode<synchronous>, transform_indices = @transform_3, window_bounds = array<i64: 8, 1>}, {pipeline_mode = #tpu.pipeline_mode<synchronous>, transform_indices = @transform_4, window_bounds = array<i64: 8, 1>}, {transform_indices = @transform_5, window_bounds = array<i64: 1, 8, 128>}]} {
    %0 = tpu.iota {dimensions = array<i32: 1>} : vector<1x128xi32>
    %c16_i32 = arith.constant 16 : i32
    %c0_i32 = arith.constant 0 : i32
    %1 = arith.cmpi eq, %c16_i32, %c0_i32 : i32
    %c1_i32 = arith.constant 1 : i32
    %2 = arith.select %1, %c1_i32, %c16_i32 : i32
    %3 = vector.broadcast %2 : i32 to vector<1x128xi32>
    %4 = arith.remsi %0, %3 : vector<1x128xi32>
    %c0_i32_0 = arith.constant 0 : i32
    %5 = vector.broadcast %c0_i32_0 : i32 to vector<1x128xi32>
    %6 = arith.cmpi ne, %4, %5 : vector<1x128xi32>
    %c0_i32_1 = arith.constant 0 : i32
    %7 = vector.broadcast %c0_i32_1 : i32 to vector<1x128xi32>
    %8 = arith.cmpi slt, %4, %7 : vector<1x128xi32>
    %c0_i32_2 = arith.constant 0 : i32
    %9 = arith.cmpi slt, %2, %c0_i32_2 : i32
    %10 = vector.broadcast %9 : i1 to vector<1x128xi1>
    %11 = vector.broadcast %10 : vector<1x128xi1> to vector<1x128xi1>
    %12 = arith.xori %8, %11 : vector<1x128xi1>
    %13 = arith.andi %12, %6 : vector<1x128xi1>
    %14 = vector.broadcast %2 : i32 to vector<1x128xi32>
    %15 = arith.addi %4, %14 : vector<1x128xi32>
    %16 = arith.select %13, %15, %4 : vector<1x128xi1>, vector<1x128xi32>
    %c0 = arith.constant 0 : index
    %c0_3 = arith.constant 0 : index
    %c0_4 = arith.constant 0 : index
    %c0_5 = arith.constant 0 : index
    %17 = vector.load %arg2[%c0, %c0_3, %c0_4, %c0_5] : memref<1x1x16x162xf32, #tpu.memory_space<vmem>>, vector<1x1x16x128xf32>
    %18 = vector.shape_cast %17 : vector<1x1x16x128xf32> to vector<16x128xf32>
    %c1_i32_6 = arith.constant 1 : i32
    %19 = vector.broadcast %c1_i32_6 : i32 to vector<1x128xi32>
    %20 = arith.cmpi sge, %16, %19 : vector<1x128xi32>
    %c17_i32 = arith.constant 17 : i32
    %21 = vector.broadcast %c17_i32 : i32 to vector<1x128xi32>
    %22 = arith.cmpi slt, %16, %21 : vector<1x128xi32>
    %23 = arith.andi %20, %22 : vector<1x128xi1>
    %cst = arith.constant 0.000000e+00 : f32
    %24 = vector.broadcast %cst : f32 to vector<16x128xf32>
    %25 = vector.shape_cast %23 : vector<1x128xi1> to vector<1x128xi1>
    %26 = vector.broadcast %25 : vector<1x128xi1> to vector<16x128xi1>
    %27 = arith.select %26, %18, %24 : vector<16x128xi1>, vector<16x128xf32>
    %c0_7 = arith.constant 0 : index
    %c0_8 = arith.constant 0 : index
    %c0_9 = arith.constant 0 : index
    %c1 = arith.constant 1 : index
    %28 = vector.load %arg2[%c0_7, %c0_8, %c0_9, %c1] : memref<1x1x16x162xf32, #tpu.memory_space<vmem>>, vector<1x1x16x128xf32>
    %29 = vector.shape_cast %28 : vector<1x1x16x128xf32> to vector<16x128xf32>
    %c0_10 = arith.constant 0 : index
    %c0_11 = arith.constant 0 : index
    %c0_12 = arith.constant 0 : index
    %c2 = arith.constant 2 : index
    %30 = vector.load %arg2[%c0_10, %c0_11, %c0_12, %c2] : memref<1x1x16x162xf32, #tpu.memory_space<vmem>>, vector<1x1x16x128xf32>
    %31 = vector.shape_cast %30 : vector<1x1x16x128xf32> to vector<16x128xf32>
    %c-1_i32 = arith.constant -1 : i32
    %32 = vector.broadcast %c-1_i32 : i32 to vector<1x128xi32>
    %33 = arith.cmpi sge, %16, %32 : vector<1x128xi32>
    %c15_i32 = arith.constant 15 : i32
    %34 = vector.broadcast %c15_i32 : i32 to vector<1x128xi32>
    %35 = arith.cmpi slt, %16, %34 : vector<1x128xi32>
    %36 = arith.andi %33, %35 : vector<1x128xi1>
    %cst_13 = arith.constant 0.000000e+00 : f32
    %37 = vector.broadcast %cst_13 : f32 to vector<16x128xf32>
    %38 = vector.shape_cast %36 : vector<1x128xi1> to vector<1x128xi1>
    %39 = vector.broadcast %38 : vector<1x128xi1> to vector<16x128xi1>
    %40 = arith.select %39, %31, %37 : vector<16x128xi1>, vector<16x128xf32>
    %c0_14 = arith.constant 0 : index
    %c0_15 = arith.constant 0 : index
    %c0_16 = arith.constant 0 : index
    %c16 = arith.constant 16 : index
    %41 = vector.load %arg2[%c0_14, %c0_15, %c0_16, %c16] : memref<1x1x16x162xf32, #tpu.memory_space<vmem>>, vector<1x1x16x128xf32>
    %42 = vector.shape_cast %41 : vector<1x1x16x128xf32> to vector<16x128xf32>
    %c1_i32_17 = arith.constant 1 : i32
    %43 = vector.broadcast %c1_i32_17 : i32 to vector<1x128xi32>
    %44 = arith.cmpi sge, %16, %43 : vector<1x128xi32>
    %c17_i32_18 = arith.constant 17 : i32
    %45 = vector.broadcast %c17_i32_18 : i32 to vector<1x128xi32>
    %46 = arith.cmpi slt, %16, %45 : vector<1x128xi32>
    %47 = arith.andi %44, %46 : vector<1x128xi1>
    %cst_19 = arith.constant 0.000000e+00 : f32
    %48 = vector.broadcast %cst_19 : f32 to vector<16x128xf32>
    %49 = vector.shape_cast %47 : vector<1x128xi1> to vector<1x128xi1>
    %50 = vector.broadcast %49 : vector<1x128xi1> to vector<16x128xi1>
    %51 = arith.select %50, %42, %48 : vector<16x128xi1>, vector<16x128xf32>
    %c0_20 = arith.constant 0 : index
    %c0_21 = arith.constant 0 : index
    %c0_22 = arith.constant 0 : index
    %c17 = arith.constant 17 : index
    %52 = vector.load %arg2[%c0_20, %c0_21, %c0_22, %c17] : memref<1x1x16x162xf32, #tpu.memory_space<vmem>>, vector<1x1x16x128xf32>
    %53 = vector.shape_cast %52 : vector<1x1x16x128xf32> to vector<16x128xf32>
    %c0_23 = arith.constant 0 : index
    %c0_24 = arith.constant 0 : index
    %c0_25 = arith.constant 0 : index
    %c18 = arith.constant 18 : index
    %54 = vector.load %arg2[%c0_23, %c0_24, %c0_25, %c18] : memref<1x1x16x162xf32, #tpu.memory_space<vmem>>, vector<1x1x16x128xf32>
    %55 = vector.shape_cast %54 : vector<1x1x16x128xf32> to vector<16x128xf32>
    %c-1_i32_26 = arith.constant -1 : i32
    %56 = vector.broadcast %c-1_i32_26 : i32 to vector<1x128xi32>
    %57 = arith.cmpi sge, %16, %56 : vector<1x128xi32>
    %c15_i32_27 = arith.constant 15 : i32
    %58 = vector.broadcast %c15_i32_27 : i32 to vector<1x128xi32>
    %59 = arith.cmpi slt, %16, %58 : vector<1x128xi32>
    %60 = arith.andi %57, %59 : vector<1x128xi1>
    %cst_28 = arith.constant 0.000000e+00 : f32
    %61 = vector.broadcast %cst_28 : f32 to vector<16x128xf32>
    %62 = vector.shape_cast %60 : vector<1x128xi1> to vector<1x128xi1>
    %63 = vector.broadcast %62 : vector<1x128xi1> to vector<16x128xi1>
    %64 = arith.select %63, %55, %61 : vector<16x128xi1>, vector<16x128xf32>
    %c0_29 = arith.constant 0 : index
    %c0_30 = arith.constant 0 : index
    %c0_31 = arith.constant 0 : index
    %c32 = arith.constant 32 : index
    %65 = vector.load %arg2[%c0_29, %c0_30, %c0_31, %c32] : memref<1x1x16x162xf32, #tpu.memory_space<vmem>>, vector<1x1x16x128xf32>
    %66 = vector.shape_cast %65 : vector<1x1x16x128xf32> to vector<16x128xf32>
    %c1_i32_32 = arith.constant 1 : i32
    %67 = vector.broadcast %c1_i32_32 : i32 to vector<1x128xi32>
    %68 = arith.cmpi sge, %16, %67 : vector<1x128xi32>
    %c17_i32_33 = arith.constant 17 : i32
    %69 = vector.broadcast %c17_i32_33 : i32 to vector<1x128xi32>
    %70 = arith.cmpi slt, %16, %69 : vector<1x128xi32>
    %71 = arith.andi %68, %70 : vector<1x128xi1>
    %cst_34 = arith.constant 0.000000e+00 : f32
    %72 = vector.broadcast %cst_34 : f32 to vector<16x128xf32>
    %73 = vector.shape_cast %71 : vector<1x128xi1> to vector<1x128xi1>
    %74 = vector.broadcast %73 : vector<1x128xi1> to vector<16x128xi1>
    %75 = arith.select %74, %66, %72 : vector<16x128xi1>, vector<16x128xf32>
    %c0_35 = arith.constant 0 : index
    %c0_36 = arith.constant 0 : index
    %c0_37 = arith.constant 0 : index
    %c33 = arith.constant 33 : index
    %76 = vector.load %arg2[%c0_35, %c0_36, %c0_37, %c33] : memref<1x1x16x162xf32, #tpu.memory_space<vmem>>, vector<1x1x16x128xf32>
    %77 = vector.shape_cast %76 : vector<1x1x16x128xf32> to vector<16x128xf32>
    %c0_38 = arith.constant 0 : index
    %c0_39 = arith.constant 0 : index
    %c0_40 = arith.constant 0 : index
    %c34 = arith.constant 34 : index
    %78 = vector.load %arg2[%c0_38, %c0_39, %c0_40, %c34] : memref<1x1x16x162xf32, #tpu.memory_space<vmem>>, vector<1x1x16x128xf32>
    %79 = vector.shape_cast %78 : vector<1x1x16x128xf32> to vector<16x128xf32>
    %c-1_i32_41 = arith.constant -1 : i32
    %80 = vector.broadcast %c-1_i32_41 : i32 to vector<1x128xi32>
    %81 = arith.cmpi sge, %16, %80 : vector<1x128xi32>
    %c15_i32_42 = arith.constant 15 : i32
    %82 = vector.broadcast %c15_i32_42 : i32 to vector<1x128xi32>
    %83 = arith.cmpi slt, %16, %82 : vector<1x128xi32>
    %84 = arith.andi %81, %83 : vector<1x128xi1>
    %cst_43 = arith.constant 0.000000e+00 : f32
    %85 = vector.broadcast %cst_43 : f32 to vector<16x128xf32>
    %86 = vector.shape_cast %84 : vector<1x128xi1> to vector<1x128xi1>
    %87 = vector.broadcast %86 : vector<1x128xi1> to vector<16x128xi1>
    %88 = arith.select %87, %79, %85 : vector<16x128xi1>, vector<16x128xf32>
    %89 = tpu.concatenate %27, %29, %40, %51, %53, %64, %75, %77, %88 in 0 : vector<16x128xf32>, vector<16x128xf32>, vector<16x128xf32>, vector<16x128xf32>, vector<16x128xf32>, vector<16x128xf32>, vector<16x128xf32>, vector<16x128xf32>, vector<16x128xf32> -> vector<144x128xf32>
    %c0_44 = arith.constant 0 : index
    %c0_45 = arith.constant 0 : index
    %90 = vector.load %arg4[%c0_44, %c0_45] : memref<8x144xf32, #tpu.memory_space<vmem>>, vector<8x144xf32>
    %cst_46 = arith.constant dense<0.000000e+00> : vector<8x128xf32>
    %91 = tpu.matmul %90, %89, %cst_46 {dimension_numbers = #tpu.dot_dimension_numbers<[1], [0], [0], [1], [0, 0, 1, 1], [], []>} : vector<8x144xf32>, vector<144x128xf32>, vector<8x128xf32> -> vector<8x128xf32>
    %c0_47 = arith.constant 0 : index
    %c0_48 = arith.constant 0 : index
    %92 = vector.load %arg5[%c0_47, %c0_48] : memref<8x1xf32, #tpu.memory_space<vmem>>, vector<8x1xf32>
    %93 = vector.broadcast %92 : vector<8x1xf32> to vector<8x128xf32>
    %94 = arith.mulf %91, %93 : vector<8x128xf32>
    %c0_49 = arith.constant 0 : index
    %c0_50 = arith.constant 0 : index
    %95 = vector.load %arg6[%c0_49, %c0_50] : memref<8x1xf32, #tpu.memory_space<vmem>>, vector<8x1xf32>
    %96 = vector.broadcast %95 : vector<8x1xf32> to vector<8x128xf32>
    %97 = arith.addf %94, %96 : vector<8x128xf32>
    %cst_51 = arith.constant 0.000000e+00 : f32
    %98 = vector.broadcast %cst_51 : f32 to vector<8x128xf32>
    %99 = arith.maximumf %97, %98 : vector<8x128xf32>
    %c0_52 = arith.constant 0 : index
    %c0_53 = arith.constant 0 : index
    %c0_54 = arith.constant 0 : index
    %100 = vector.load %arg3[%c0_52, %c0_53, %c0_54] : memref<1x8x128xf32, #tpu.memory_space<vmem>>, vector<1x8x128xf32>
    %101 = vector.shape_cast %100 : vector<1x8x128xf32> to vector<8x128xf32>
    %102 = arith.addf %99, %101 : vector<8x128xf32>
    %c0_55 = arith.constant 0 : index
    %c0_56 = arith.constant 0 : index
    %c0_57 = arith.constant 0 : index
    %103 = vector.load %arg7[%c0_55, %c0_56, %c0_57] : memref<1x8x128xf32, #tpu.memory_space<vmem>>, vector<1x8x128xf32>
    %104 = vector.shape_cast %103 : vector<1x8x128xf32> to vector<8x128xf32>
    %105 = vector.shape_cast %102 : vector<8x128xf32> to vector<1x8x128xf32>
    tpu.vector_store %arg7[%c0_55, %c0_56, %c0_57], %105 {strides = array<i32>} : memref<1x8x128xf32, #tpu.memory_space<vmem>>, vector<1x8x128xf32>,
    return
  }
  func.func @transform_0(%arg0: i32, %arg1: i32) -> (i32, i32, i32, i32) {
    %c0_i32 = arith.constant 0 : i32
    %c0_i32_0 = arith.constant 0 : i32
    %c0_i32_1 = arith.constant 0 : i32
    return %arg0, %arg1, %c0_i32, %c0_i32_0 : i32, i32, i32, i32
  }
  func.func @transform_1(%arg0: i32, %arg1: i32) -> (i32, i32, i32) {
    %c0_i32 = arith.constant 0 : i32
    %c0_i32_0 = arith.constant 0 : i32
    return %arg0, %c0_i32, %arg1 : i32, i32, i32
  }
  func.func @transform_2(%arg0: i32, %arg1: i32) -> (i32, i32) {
    %c0_i32 = arith.constant 0 : i32
    %c0_i32_0 = arith.constant 0 : i32
    %c0_i32_1 = arith.constant 0 : i32
    return %c0_i32, %c0_i32_0 : i32, i32
  }
  func.func @transform_3(%arg0: i32, %arg1: i32) -> (i32, i32) {
    %c0_i32 = arith.constant 0 : i32
    %c0_i32_0 = arith.constant 0 : i32
    %c0_i32_1 = arith.constant 0 : i32
    return %c0_i32, %c0_i32_0 : i32, i32
  }
  func.func @transform_4(%arg0: i32, %arg1: i32) -> (i32, i32) {
    %c0_i32 = arith.constant 0 : i32
    %c0_i32_0 = arith.constant 0 : i32
    %c0_i32_1 = arith.constant 0 : i32
    return %c0_i32, %c0_i32_0 : i32, i32
  }
  func.func @transform_5(%arg0: i32, %arg1: i32) -> (i32, i32, i32) {
    %c0_i32 = arith.constant 0 : i32
    %c0_i32_0 = arith.constant 0 : i32
    return %arg0, %c0_i32, %arg1 : i32, i32, i32
  }
}

</mosaic_0001>

<bundles_post_ra>
// kernel: tpu_custom_call.1
= control target key start
LH: loop header
LB: loop body
LE: loop exit
PB: predicated region body
PF: predicated region fallthrough
CT: control target
= control target key end

     0   :  { %s1278_s0 = inlined_call_operand.hbm [shape: f32[2,2,16,162], index: 0, kind: input, shape index: {}]   ;;  %s1279_s1 = inlined_call_operand.hbm [shape: f32[2,8,256], index: 1, kind: input, shape index: {}]   ;;  %s1280_s2 = inlined_call_operand.vmem [shape: f32[8,144], index: 2, kind: input, shape index: {}]   ;;  %s1281_s3 = inlined_call_operand.vmem [shape: f32[8,1], index: 3, kind: input, shape index: {}]   ;;  %s1282_s4 = inlined_call_operand.vmem [shape: f32[8,1], index: 4, kind: input, shape index: {}]   ;;  %s1283_s5 = inlined_call_operand.hbm [shape: f32[2,8,256], index: 5, kind: output, shape index: {}]  }
   0x1   :  { %1290 = sst [smem:[#allocation17_spill]] %s1278_s0 }
   0x2   :  { %1291 = sst [smem:[#allocation18_spill]] %s1283_s5 }
   0x3   :  { %10 = vsyncpa [#allocation3], 0 }
   0x4   :  { %12 = vsyncpa [#allocation3 + $0x1], 0 }
   0x5   :  { %13 = vsyncpa [#allocation6], 0 }
   0x6   :  { %15 = vsyncpa [#allocation6 + $0x1], 0 }
   0x7   :  { %16 = vsyncpa [#allocation4], 0 }
   0x8   :  { %18 = vsyncpa [#allocation4 + $0x1], 0  ;;  %s1004_s18 = smov 0   ;;  %s1006_s19 = smov 0  }
   0x9   :  { %s1008_s20 = smov 0   ;;  %s1010_s21 = smov 0  }
   0xa   :  { %s1012_s22 = smov 0   ;;  %s1014_s23 = smov 0  }
   0xb   :  { %s1016_s24 = smov 0   ;;  %s1018_s25 = smov 0  }
   0xc LB: > { %1292 = sst [smem:[#allocation11_spill]] %s929_s18  ;;  %s671_s26 = sadd.s32 4294967295, %s957_s25   ;;  %s957_s25 = sphi %s1018_s25, %s24_s25   ;;  %s953_s24 = sphi %s1016_s24, %s1321_s24   ;;  %s949_s23 = sphi %s1014_s23, %s1320_s23   ;;  %s945_s22 = sphi %s1012_s22, %s1319_s22   ;;  %s941_s21 = sphi %s1010_s21, %s1318_s21   ;;  %s937_s20 = sphi %s1008_s20, %s1313_s20   ;;  %s933_s19 = sphi %s1006_s19, %s1317_s19   ;;  %s929_s18 = sphi %s1004_s18, %s1316_s18  }
   0xd   : > { %1293 = sst [smem:[#allocation12_spill]] %s937_s20  ;;  %s672_s27 = sadd.s32 4294967294, %s957_s25  }
   0xe   : > { %s33_s28 = sadd.s32 1, %s949_s23  ;;  %s36_s29 = sadd.s32 1, %s953_s24 }
   0xf   : > { %p34_p0 = scmp.ge.s32.totalorder %s33_s28, 2  ;;  %s45_s30 = sadd.s32 1, %s937_s20 }
  0x10   : > { %p52_p1 = scmp.ne.s32.totalorder %s937_s20, %s933_s19  ;;  %p53_p2 = scmp.eq.s32.totalorder %s957_s25, 0 }
  0x11   : > { %s1323_s28 = smov (%p34_p0, %s33_s28), 0  ;;  %s1325_s29 = smov (!%p34_p0, %s36_s29), %s953_s24 }
  0x12   : > { %1294 = sst [smem:[#allocation13_spill]] %s1323_s28  ;;  %s41_s6 = ssub.s32 %s949_s23, %s1323_s28 }
  0x13   : > { %p1057_p3 = por %p53_p2, %p52_p1  ;;  %p38_p4 = scmp.ge.s32.totalorder %s1325_s29, 2 }
  0x14   : > { %p58_p5 = scmp.ne.s32.totalorder %s933_s19, %s929_s18  ;;  %p59_p6 = scmp.eq.s32.totalorder %s671_s26, 0 }
  0x15   : > { %p175_p7 = scmp.eq.s32.totalorder %s671_s26, 3  ;;  %s1327_s29 = smov (%p38_p4, %s1325_s29), 0 }
  0x16   : > { %1296 = sst [smem:[#allocation14_spill]] %s1327_s29  ;;  %p1065_p8 = por %p59_p6, %p58_p5 }
  0x17   : > { %p1069_p9 = por %p175_p7, %p52_p1  ;;  %s40_s10 = ssub.s32 %s953_s24, %s1327_s29 }
  0x18   : > { %p181_p10 = scmp.eq.s32.totalorder %s672_s27, 3  ;;  %s42_s11 = sor.u32 %s41_s6, %s40_s10 }
  0x19   : > { %p43_p11 = scmp.eq.s32.totalorder %s42_s11, 0  ;;  %p721_p13 = scmp.lt.s32.totalorder %s957_s25, 4 }
  0x1a   : > { %p1075_p12 = por %p181_p10, %p58_p5  ;;  %s1081_s13 = sand.u32 1, %s937_s20  }
  0x1b   : > { %s1084_s14 = scalar_select %p43_p11, %s937_s20, %s45_s30  }
  0x1c   : > { %s1299_s12 = scalar_select %p1075_p12, 1, 0 }
  0x1d   : > { %1301 = sst [smem:[#allocation16_spill]] %s1084_s14  ;;  %s675_s15 = sshll.u32 %s1081_s13, 5 }
  0x1e   : > { %1300 = sst [smem:[#allocation15_spill]] %s1299_s12  ;;  %s676_s16 = sshll.u32 %s949_s23, 2 }
  0x1f   : > { %s677_s17 = sshll.u32 %s953_s24, 3  ;;  %s214_s26 = scalar_lea.vmem [#allocation2], %s675_s15 }
  0x20   : > { %s223_s29 = sshll.u32 %s214_s26, 4  ;;  %s220_s28 = sadd.s32 %s677_s17, %s676_s16  ;;  %s224_s29 = int_to_ptr.vmem [resolvable:$true] %s223_s29 }
  0x21   : > { %s678_s27 = sshll.u32 %s220_s28, 7  ;;  %p1091_p0 = pnand %p721_p13, %p1057_p3 }
  0x22   : > { %s1303_s0 = sld [smem:[#allocation17_spill]]  ;;  %s211_s14 = scalar_lea.sflag [#allocation3], %s1081_s13 }
  0x23   : > { %p803_p1 = pneg %p1091_p0  ;;  %s814_s20 = scalar_lea.vmem %s224_s29, 512 }
  0x24   : > { %p815_p2 = scmp.ne.s32.totalorder %s224_s29, %s814_s20  ;;  %s959_s28 = smov [#allocation2]  }
  0x25   : > { %s819_s7 = sshll.u32 %s959_s28, 4  ;;  %s820_s7 = int_to_ptr.vmem [resolvable:$false] %s819_s7 }
  0x26   : > { %p817_p4 = pnand %p815_p2, %p803_p1  ;;  %s821_s15 = scalar_lea.vmem %s820_s7, 1024 }
  0x27   : > { %p822_p3 = scmp.lt.s32.totalorder %s224_s29, %s820_s7  ;;  %p823_p6 = scmp.lt.s32.totalorder %s821_s15, %s814_s20 }
  0x28   : > { %s222_s30 = scalar_lea.hbm %s1303_s0, %s678_s27  ;;  %p818_p5 = pneg %p817_p4 }
  0x29   : > { %p824_p7 = por %p823_p6, %p822_p3 }
  0x2b   : > { %p825_p10 = pnand %p824_p7, %p818_p5 }
  0x2d   : > { %828 = shalt.err (!%p825_p10)
}
  0x2e   : > { %s960_s16 = smov 256   ;;  %s961_s17 = smov 16  }
  0x2f   : > { %713 = dma.hbm_to_vmem [thread:$0]  (!%p1091_p0), %s222_s30, 512, %s224_s29, %s211_s14, %s960_s16, %s960_s16, %s961_s17  }
  0x30   : > { %p682_p11 = scmp.ge.s32.totalorder %s957_s25, 1  ;;  %p251_p13 = scmp.lt.s32.totalorder %s957_s25, 5 }
  0x31   : > { %s679_s26 = sshll.u32 %s1081_s13, 3  ;;  %s680_s27 = sshll.u32 %s953_s24, 1 }
  0x32   : > { %p1109_p2 = pnand %p682_p11, %p251_p13  ;;  %s237_s10 = scalar_lea.vmem [#allocation5], %s679_s26 }
  0x33   : > { %s246_s11 = sshll.u32 %s237_s10, 4  ;;  %s242_s28 = sadd.s32 %s949_s23, %s680_s27  ;;  %s247_s11 = int_to_ptr.vmem [resolvable:$true] %s246_s11 }
  0x34   : > { %s681_s7 = sshll.u32 %s242_s28, 7  ;;  %s234_s18 = scalar_lea.sflag [#allocation6], %s1081_s13 }
  0x35   : > { %s244_s12 = scalar_lea.hbm %s1279_s1, %s681_s7  ;;  %s842_s5 = scalar_lea.vmem %s247_s11, 128 }
  0x36   : > { %p843_p4 = scmp.ne.s32.totalorder %s247_s11, %s842_s5  ;;  %s962_s29 = smov [#allocation5]  }
  0x37   : > { %s847_s14 = sshll.u32 %s962_s29, 4  ;;  %s848_s14 = int_to_ptr.vmem [resolvable:$false] %s847_s14 }
  0x38   : > { %p845_p5 = pnand %p843_p4, %p803_p1  ;;  %s849_s30 = scalar_lea.vmem %s848_s14, 256 }
  0x39   : > { %p850_p6 = scmp.lt.s32.totalorder %s247_s11, %s848_s14  ;;  %p851_p7 = scmp.lt.s32.totalorder %s849_s30, %s842_s5 }
  0x3a   : > { %p846_p3 = pneg %p845_p5 }
  0x3b   : > { %p852_p10 = por %p851_p7, %p850_p6 }
  0x3d   : > { %p853_p11 = pnand %p852_p10, %p846_p3 }
  0x3f   : > { %856 = shalt.err (!%p853_p11)
}
  0x40   : > { %716 = dma.hbm_to_vmem [thread:$0]  (!%p1091_p0), %s244_s12, 128, %s247_s11, %s234_s18  }
  0x41   : > { %255 = sbr.rel (%p1109_p2) target bundleno = 467 (0x1d3), region = 40  ;;  %s1127_s0 = sand.u32 (!%p1109_p2), 1, %s933_s19  }
  0x42   : > { %s683_s13 = sshll.u32 (!%p1109_p2), %s1127_s0, 5  ;;  %s258_s16 = scalar_lea.sflag (!%p1109_p2), [#allocation3], %s1127_s0 }
  0x43   : > { %s261_s17 = scalar_lea.vmem (!%p1109_p2), [#allocation2], %s683_s13 }
  0x46   : > { %916 = dma.done.wait (%p1065_p8), %s258_s16, 512  }
  0x47   : > { %918 = vsyncadd (%p1065_p8), %s258_s16, 4294966784  ;;  %s684_s5 = sshll.u32 %s1127_s0, 3  ;;  %s267_s18 = scalar_lea.sflag [#allocation6], %s1127_s0 }
  0x48   : > { %s1139_s12 = scalar_lea.vmem [#allocation5], %s684_s5 }
  0x49   : > { %920 = dma.done.wait (%p1065_p8), %s267_s18, 128  }
  0x4a   : > { %922 = vsyncadd (%p1065_p8), %s267_s18, 4294967168  ;;  %v963_v0 = vmov 0.0   ;;  %v1146_v1 = vld [vmem:[%s261_s17 + $0x10] sm:$0xff]  ;;  %v1148_v2 = vld [vmem:[%s261_s17] sm:$0xff]  ;;  %s964_s6 = smov 95   ;;  %s965_s26 = smov 96   ;;  %v302_v9 = vlaneseq }
  0x4b   : > { %456 = vmatprep.subr.mxu0 %v963_v0  ;;  %441 = vrot.lane.b32.xlu0 %v1146_v1, %s964_s6  ;;  %v326_v3 = vld [vmem:[%s261_s17 + $0x18] sm:$0xff]  ;;  %v325_v4 = vld [vmem:[%s261_s17 + $0x8] sm:$0xff]  ;;  %s966_s8 = smov 110   ;;  %s967_s20 = smov 111   ;;  %vm452_vm0 = vcmask 130048   ;;  %v971_v6 = vmov 0  }
  0x4c   : > { %437 = vrot.lane.b32.xlu1 %v1148_v2, %s964_s6  ;;  %s968_s27 = smov 112   ;;  %s969_s10 = smov 126   ;;  %v451_v5 = vld [vmem:[%s1280_s2 + $0x8] sm:$0xff]  ;;  %799 = vset.pattern.permute.xlu0 %v971_v6  ;;  %v526_v7 = vld [vmem:[%s1281_s3] sm:$0xff]  ;;  %v303_v10 = vand.u32 127, %v302_v9  ;;  %vm445_vm1 = vcmask 777216  }
  0x4d   : > { %s970_s7 = smov 127   ;;  %698 = vmatprep.mubr.msk.f32.mxu0 %vm452_vm0, %v451_v5  ;;  %800 = vset.pattern.permute.xlu1 %v971_v6  ;;  %s972_s15 = smov 94   ;;  %v533_v8 = vld [vmem:[%s1282_s4] sm:$0xff]  ;;  %vm389_vm2 = vcmask 785408   ;;  %vm374_vm4 = vcmask 900096   ;;  %vm432_vm6 = vcmask 908288  }
  0x4e   : > { %v308_v13 = vand.u32 15, %v303_v10  ;;  %vm359_vm7 = vcmask 916480   ;;  %vm344_vm8 = vcmask 1031168   ;;  %vm419_vm9 = vcmask 1039360   ;;  %v450_v61 = vld [vmem:[%s1280_s2] sm:$0xff]  ;;  %s700_s18 = sshll.u32 %s945_s22, 1 }
  0x4f   : > { %443 = vrot.lane.b32.xlu0 %v326_v3, %s964_s6  ;;  %vm404_vm10 = vcmask 769024   ;;  %v541_v6 = vld [vmem:[%s1139_s12] sm:$0xff]  ;;  %s1309_s11 = sld [smem:[#allocation18_spill]]  ;;  %s545_s22 = scalar_lea.sflag [#allocation4], %s1127_s0 }
  0x50   : > { %439 = vrot.lane.b32.xlu1 %v325_v4, %s964_s6  ;;  %vm1176_vm3 = vcmp.ge.s32.totalorder %v308_v13, 1  ;;  %vm1187_vm5 = vcmp.lt.s32.totalorder %v308_v13, 15  ;;  %s556_s6 = sadd.s32 %s941_s21, %s700_s18  ;;  %s973_s21 = smov [#allocation7]  }
  0x51   : > { %s861_s12 = sshll.u32 %s973_s21, 4  ;;  %s862_s12 = int_to_ptr.vmem [resolvable:$false] %s861_s12 }
  0x53   : > { %385 = vrot.lane.b32.xlu0 %v1146_v1, %s965_s26 }
  0x54   : > { %387 = vrot.lane.b32.xlu1 %v326_v3, %s965_s26 }
  0x57   : > { %381 = vrot.lane.b32.xlu0 %v1148_v2, %s965_s26 }
  0x58   : > { %383 = vrot.lane.b32.xlu1 %v325_v4, %s965_s26  ;;  %s701_s26 = sshll.u32 %s556_s6, 7 }
  0x59   : > { %s558_s28 = scalar_lea.hbm %s1309_s11, %s701_s26 }
  0x5b   : > { %370 = vrot.lane.b32.xlu0 %v1146_v1, %s966_s8 }
  0x5c   : > { %372 = vrot.lane.b32.xlu1 %v326_v3, %s966_s8 }
  0x5f   : > { %366 = vrot.lane.b32.xlu0 %v1148_v2, %s966_s8 }
  0x60   : > { %368 = vrot.lane.b32.xlu1 %v325_v4, %s966_s8  ;;  %s301_s8 = scalar_lea.vmem [#allocation7], %s684_s5 }
  0x63   : > { %428 = vrot.lane.b32.xlu0 %v1146_v1, %s967_s20 }
  0x64   : > { %430 = vrot.lane.b32.xlu1 %v326_v3, %s967_s20 }
  0x67   : > { %424 = vrot.lane.b32.xlu0 %v1148_v2, %s967_s20 }
  0x68   : > { %426 = vrot.lane.b32.xlu1 %v325_v4, %s967_s20  ;;  %s560_s20 = sshll.u32 %s301_s8, 4  ;;  %s561_s20 = int_to_ptr.vmem [resolvable:$true] %s560_s20 }
  0x69   : > { %p864_p13 = scmp.lt.s32.totalorder %s561_s20, %s862_s12 }
  0x6b   : > { %355 = vrot.lane.b32.xlu0 %v1146_v1, %s968_s27 }
  0x6c   : > { %357 = vrot.lane.b32.xlu1 %v326_v3, %s968_s27 }
  0x6f   : > { %351 = vrot.lane.b32.xlu0 %v1148_v2, %s968_s27 }
  0x70   : > { %353 = vrot.lane.b32.xlu1 %v325_v4, %s968_s27 }
  0x73   : > { %340 = vrot.lane.b32.xlu0 %v1146_v1, %s969_s10 }
  0x74   : > { %342 = vrot.lane.b32.xlu1 %v326_v3, %s969_s10 }
  0x77   : > { %336 = vrot.lane.b32.xlu0 %v1148_v2, %s969_s10 }
  0x78   : > { %338 = vrot.lane.b32.xlu1 %v325_v4, %s969_s10 }
  0x7b   : > { %415 = vrot.lane.b32.xlu0 %v1146_v1, %s970_s7 }
  0x7c   : > { %417 = vrot.lane.b32.xlu1 %v326_v3, %s970_s7 }
  0x7f   : > { %411 = vrot.lane.b32.xlu0 %v1148_v2, %s970_s7 }
  0x80   : > { %413 = vrot.lane.b32.xlu1 %v325_v4, %s970_s7  ;;  %s857_s7 = scalar_lea.vmem %s561_s20, 128 }
  0x81   : > { %p858_p8 = scmp.ne.s32.totalorder %s561_s20, %s857_s7 }
  0x83   : > { %400 = vrot.lane.b32.xlu0 %v1146_v1, %s972_s15  ;;  %p859_p0 = pnand %p858_p8, %p1069_p9 }
  0x84   : > { %402 = vrot.lane.b32.xlu1 %v326_v3, %s972_s15 }
  0x85   : > { %p860_p1 = pneg %p859_p0 }
  0x87   : > { %396 = vrot.lane.b32.xlu0 %v1148_v2, %s972_s15 }
  0x88   : > { %398 = vrot.lane.b32.xlu1 %v325_v4, %s972_s15  ;;  %s863_s15 = scalar_lea.vmem %s862_s12, 256 }
  0x89   : > { %p865_p2 = scmp.lt.s32.totalorder %s863_s15, %s857_s7 }
  0x8b   : > { %529 = vperm.xlu0 %799, %v526_v7   ;;  %p866_p4 = por %p865_p2, %p864_p13 }
  0x8c   : > { %536 = vperm.xlu1 %800, %v533_v8  }
  0x8d   : > { %p867_p5 = pnand %p866_p4, %p860_p1 }
  0xbd   : > { %v442_v11 = vpop.permute.xlu0 %441 }
  0xbe   : > { %v438_v12 = vpop.permute.xlu1 %437 }
  0xc1   : > { %v444_v14 = vpop.permute.xlu0 %443 }
  0xc2   : > { %v440_v15 = vpop.permute.xlu1 %439  ;;  %v447_v16 = vsel %vm445_vm1, %v442_v11, %v444_v14 }
  0xc3   : > { %457 = vmatpush1.msra.mxu0 %v447_v16  ;;  %v446_v17 = vsel %vm445_vm1, %v438_v12, %v440_v15 }
  0xc4   : > { %458 = vmatprep.subr.mxu0 %v963_v0 }
  0xc5   : > { %v386_v19 = vpop.permute.xlu0 %385  ;;  %459 = vmatpush1.msra.mxu0 %v446_v17 }
  0xc6   : > { %v388_v20 = vpop.permute.xlu1 %387  ;;  %460 = vmatprep.subr.mxu0 %v963_v0 }
  0xc7   : > { %v391_v21 = vsel %vm389_vm2, %v386_v19, %v388_v20 }
  0xc8   : > { %686 = vmatpush1.msk.msra.mxu0 %vm1176_vm3, %v391_v21 }
  0xc9   : > { %462 = vmatprep.subr.mxu0 %v963_v0  ;;  %v382_v22 = vpop.permute.xlu0 %381 }
  0xca   : > { %v384_v23 = vpop.permute.xlu1 %383 }
  0xcb   : > { %v390_v24 = vsel %vm389_vm2, %v382_v22, %v384_v23 }
  0xcc   : > { %687 = vmatpush1.msk.msra.mxu0 %vm1176_vm3, %v390_v24 }
  0xcd   : > { %464 = vmatprep.subr.mxu0 %v963_v0  ;;  %v371_v26 = vpop.permute.xlu0 %370 }
  0xce   : > { %v373_v27 = vpop.permute.xlu1 %372 }
  0xcf   : > { %v376_v28 = vsel %vm374_vm4, %v371_v26, %v373_v27 }
  0xd0   : > { %688 = vmatpush1.msk.msra.mxu0 %vm1187_vm5, %v376_v28 }
  0xd1   : > { %466 = vmatprep.subr.mxu0 %v963_v0  ;;  %v367_v29 = vpop.permute.xlu0 %366 }
  0xd2   : > { %v369_v30 = vpop.permute.xlu1 %368 }
  0xd3   : > { %v375_v31 = vsel %vm374_vm4, %v367_v29, %v369_v30 }
  0xd4   : > { %689 = vmatpush1.msk.msra.mxu0 %vm1187_vm5, %v375_v31 }
  0xd5   : > { %468 = vmatprep.subr.mxu0 %v963_v0  ;;  %v429_v32 = vpop.permute.xlu0 %428 }
  0xd6   : > { %v431_v33 = vpop.permute.xlu1 %430 }
  0xd7   : > { %v434_v34 = vsel %vm432_vm6, %v429_v32, %v431_v33 }
  0xd8   : > { %469 = vmatpush1.msra.mxu0 %v434_v34 }
  0xd9   : > { %470 = vmatprep.subr.mxu0 %v963_v0  ;;  %v425_v35 = vpop.permute.xlu0 %424 }
  0xda   : > { %v427_v36 = vpop.permute.xlu1 %426 }
  0xdb   : > { %v433_v37 = vsel %vm432_vm6, %v425_v35, %v427_v36 }
  0xdc   : > { %471 = vmatpush1.msra.mxu0 %v433_v37 }
  0xdd   : > { %472 = vmatprep.subr.mxu0 %v963_v0  ;;  %v356_v38 = vpop.permute.xlu0 %355 }
  0xde   : > { %v358_v39 = vpop.permute.xlu1 %357 }
  0xdf   : > { %v361_v40 = vsel %vm359_vm7, %v356_v38, %v358_v39 }
  0xe0   : > { %690 = vmatpush1.msk.msra.mxu0 %vm1176_vm3, %v361_v40 }
  0xe1   : > { %474 = vmatprep.subr.mxu0 %v963_v0  ;;  %v352_v41 = vpop.permute.xlu0 %351 }
  0xe2   : > { %v354_v42 = vpop.permute.xlu1 %353 }
  0xe3   : > { %v360_v43 = vsel %vm359_vm7, %v352_v41, %v354_v42 }
  0xe4   : > { %691 = vmatpush1.msk.msra.mxu0 %vm1176_vm3, %v360_v43 }
  0xe5   : > { %476 = vmatprep.subr.mxu0 %v963_v0  ;;  %v341_v44 = vpop.permute.xlu0 %340 }
  0xe6   : > { %v343_v45 = vpop.permute.xlu1 %342 }
  0xe7   : > { %v346_v46 = vsel %vm344_vm8, %v341_v44, %v343_v45 }
  0xe8   : > { %692 = vmatpush1.msk.msra.mxu0 %vm1187_vm5, %v346_v46 }
  0xe9   : > { %478 = vmatprep.subr.mxu0 %v963_v0  ;;  %v337_v47 = vpop.permute.xlu0 %336 }
  0xea   : > { %v339_v48 = vpop.permute.xlu1 %338 }
  0xeb   : > { %v345_v49 = vsel %vm344_vm8, %v337_v47, %v339_v48 }
  0xec   : > { %693 = vmatpush1.msk.msra.mxu0 %vm1187_vm5, %v345_v49 }
  0xed   : > { %480 = vmatprep.subr.mxu0 %v963_v0  ;;  %v416_v50 = vpop.permute.xlu0 %415 }
  0xee   : > { %v418_v51 = vpop.permute.xlu1 %417 }
  0xef   : > { %v421_v52 = vsel %vm419_vm9, %v416_v50, %v418_v51 }
  0xf0   : > { %481 = vmatpush1.msra.mxu0 %v421_v52 }
  0xf1   : > { %482 = vmatprep.subr.mxu0 %v963_v0  ;;  %v412_v53 = vpop.permute.xlu0 %411 }
  0xf2   : > { %v414_v54 = vpop.permute.xlu1 %413 }
  0xf3   : > { %v420_v55 = vsel %vm419_vm9, %v412_v53, %v414_v54 }
  0xf4   : > { %483 = vmatpush1.msra.mxu0 %v420_v55 }
  0xf5   : > { %484 = vmatprep.subr.mxu0 %v963_v0  ;;  %v401_v56 = vpop.permute.xlu0 %400 }
  0xf6   : > { %694 = vmatpush1.msk.msra.mxu0 %vm1176_vm3, %v1146_v1  ;;  %v403_v57 = vpop.permute.xlu1 %402 }
  0xf7   : > { %486 = vmatprep.subr.mxu0 %v963_v0  ;;  %v406_v58 = vsel %vm404_vm10, %v401_v56, %v403_v57 }
  0xf8   : > { %695 = vmatpush1.msk.msra.mxu0 %vm1176_vm3, %v1148_v2 }
  0xf9   : > { %516 = vmatprep.subr.mxu0 %v963_v0  ;;  %v397_v59 = vpop.permute.xlu0 %396 }
  0xfa   : > { %696 = vmatpush2.msk.msra.mxu0 %vm1187_vm5, %v406_v58  ;;  %v399_v60 = vpop.permute.xlu1 %398 }
  0xfb   : > { %v405_v62 = vsel %vm404_vm10, %v397_v59, %v399_v60  ;;  %518 = vmatprep.subr.mxu0 %v963_v0 }
  0xfc   : > { %697 = vmatpush2.msk.msra.mxu0 %vm1187_vm5, %v405_v62 }
  0xfd   : > { %521 = vmatmul.mubr.f32.vlgmr.msra.gmra.mxu0 %v450_v61 }
 0x106   : > { %v530_v63 = vpop.permute.xlu0 %529 }
 0x107   : > { %v537_v2 = vpop.permute.xlu1 %536 }
 0x1bd   : > { %v522_v1 = vpop.f32.mrf.mxu0 }
 0x1be   : > { %v532_v3 = vmul.f32 %v530_v63, %v522_v1 }
 0x1bf   : > { %v524_v4 = vpop.f32.mrf.mxu0 }
 0x1c0   : > { %v539_v5 = vadd.f32 %v537_v2, %v532_v3 }
 0x1c2   : > { %v540_v0 = vmax.f32 %v539_v5, 0.0 }
 0x1c4   : > { %v542_v7 = vadd.f32 %v541_v6, %v540_v0 }
 0x1c6   : > { %543 = vst [vmem:[%s301_s8] sm:$0xff] %v542_v7 }
 0x1c7   : > { %870 = shalt.err (!%p867_p5)
}
 0x1c8   : > { %s871_s5 = scalar_lea.hbm %s558_s28, 128  ;;  %s875_s14 = scalar_lea.hbm %s1309_s11, 512 }
 0x1c9   : > { %p872_p3 = scmp.ne.s32.totalorder %s558_s28, %s871_s5  ;;  %p876_p10 = scmp.lt.s32.totalorder %s558_s28, %s1309_s11 }
 0x1ca   : > { %p877_p11 = scmp.lt.s32.totalorder %s875_s14, %s871_s5 }
 0x1cb   : > { %p873_p6 = pnand %p872_p3, %p1069_p9 }
 0x1cc   : > { %p878_p8 = por %p877_p11, %p876_p10 }
 0x1cd   : > { %p874_p7 = pneg %p873_p6 }
 0x1cf   : > { %p879_p0 = pnand %p878_p8, %p874_p7 }
 0x1d1   : > { %882 = shalt.err (!%p879_p0)
}
 0x1d2   : > { %708 = dma.vmem_to_hbm [thread:$0]  (%p1069_p9), %s561_s20, 128, %s558_s28, %s545_s22  }
 0x1d3 PF: > { %s1310_s16 = sld [smem:[#allocation11_spill]]  ;;  %p722_p1 = scmp.ge.s32.totalorder %s957_s25, 2 }
 0x1d5   : > { %p718_p13 = pnand %p722_p1, %p1075_p12 }
 0x1d7   : > { %p719_p2 = pneg %p718_p13 }
 0x1d9   : > { %s572_s18 = sand.u32 1, %s1310_s16  }
 0x1da   : > { %s573_s6 = scalar_lea.sflag [#allocation4], %s572_s18 }
 0x1db   : > { %924 = dma.done.wait (%p719_p2), %s573_s6, 128  }
 0x1dc   : > { %926 = vsyncadd (%p719_p2), %s573_s6, 4294967168  ;;  %s24_s25 = sadd.s32 1, %s957_s25   ;;  %s1312_s26 = sld [smem:[#allocation12_spill]] }
 0x1dd   : > { %p21_p4 = scmp.ge.s32.totalorder %s24_s25, 6   ;;  %s1313_s20 = sld [smem:[#allocation16_spill]] }
 0x1de   : > { %s1314_s9 = sld [smem:[#allocation13_spill]]  ;;  %s1316_s18 = smov %s933_s19 }
 0x1df   : > { %s1315_s8 = sld [smem:[#allocation14_spill]]  ;;  %s1318_s21 = smov %s949_s23 }
 0x1e0   : > { %s1319_s22 = smov %s953_s24 }
 0x1e1   :  { %23 = sbr.rel (!%p21_p4) target bundleno = 12 (0xc), region = 98 }
 0x1e2   : > { %s1317_s19 = smov %s1312_s26 }
 0x1e4   : > { %s1320_s23 = smov %s1314_s9 }
 0x1e5   : > { %s1321_s24 = smov %s1315_s8 }
 0x1e6   :  { %578 = vsyncpa [#allocation3], 1 }
 0x1e7   :  { %580 = vsyncpa [#allocation3 + $0x1], 1 }
 0x1e8   :  { %581 = vsyncpa [#allocation6], 1 }
 0x1e9   :  { %583 = vsyncpa [#allocation6 + $0x1], 1 }
 0x1ea   :  { %584 = vsyncpa [#allocation4], 1 }
 0x1eb   :  { %586 = vsyncpa [#allocation4 + $0x1], 1 }

</bundles_post_ra>
